<compile_context>
chip_gen: v7x
topology: tpu7x:2x2x1
jax: 0.10.0
libtpu: 0.0.40
codegen_flags: <defaults>
</compile_context>

<pallas_src>
import jax
import jax.numpy as jnp
from jax.experimental import pallas as pl
from jax.experimental.pallas import tpu as pltpu


_MIN_SPLIT = 128                    # split into >=2 grid steps once batch >= 2*_MIN_SPLIT
_VMEM_BUDGET = 24 * 1024 * 1024     # per-step working-set cap (v7x has only 64 MiB VMEM)


def _round_up(x, m):
    return ((x + m - 1) // m) * m


def _qnet_twin_duel_kernel(
    s_ref,                    # (TB, state_dim)  input dtype (f32 or bf16)
    w1_ref, b1_ref,           # (state_dim, mid) bf16, (1, mid) f32
    w2_ref, b2_ref,           # (mid, mid) bf16,       (1, mid) f32
    wh_ref, bh_ref,           # fused head L1: (mid, 2*mid) bf16, (1, 2*mid) f32
    wo_ref, bo_ref,           # folded val+adv+dueling-combine: (2*mid, n_out) bf16, (1, n_out) f32
    q_ref,                    # (TB, n_out) f32
):
    f32, bf16 = jnp.float32, jnp.bfloat16

    x = s_ref[...].astype(bf16)          # no-op when the producer already emits bf16

    # Shared trunk: Linear -> ReLU -> Linear -> ReLU (MXU bf16, f32 accumulate/elementwise).
    h = jnp.dot(x, w1_ref[...], preferred_element_type=f32) + b1_ref[...]
    h = jnp.maximum(h, 0.0)
    h = jnp.dot(h.astype(bf16), w2_ref[...], preferred_element_type=f32) + b2_ref[...]
    h = jnp.maximum(h, 0.0)

    # Fused first layers of both heads -> (TB, 2*mid) = [value_hidden | adv_hidden].
    heads = jnp.dot(h.astype(bf16), wh_ref[...], preferred_element_type=f32) + bh_ref[...]
    heads = jnp.maximum(heads, 0.0)

    # Value projection + advantage projection + dueling combine, all folded into one
    # lane-dense matmul (columns >= action_dim are zero and sliced off in the wrapper).
    q_ref[...] = (
        jnp.dot(heads.astype(bf16), wo_ref[...], preferred_element_type=f32) + bo_ref[...]
    )


def prepare_params(params):
    """Fuse / fold / pad / cast the PyTorch-equivalent parameters for the kernel."""
    (w1, b1, w2, b2, wv1, bv1, wv2, bv2, wa1, ba1, wa2, ba2) = params
    f32, bf16 = jnp.float32, jnp.bfloat16
    mid = w1.shape[1]
    action_dim = wa2.shape[1]
    n_out = max(128, _round_up(action_dim, 128))      # lane-dense output width

    # Fused first layers of both heads: columns [0:mid]=value hidden, [mid:2*mid]=adv hidden.
    wh = jnp.concatenate([wv1, wa1], axis=1).astype(bf16)                 # (mid, 2*mid)
    bh = jnp.concatenate([bv1, ba1], axis=1).astype(f32)                  # (1, 2*mid)

    # Fold  q[:, j] = (val_hid @ wv2 + bv2) + (adv_hid @ wa2 + ba2)[:, j]
    #                 - mean_k (adv_hid @ wa2 + ba2)[:, k]
    # into a single (2*mid, n_out) weight + (1, n_out) bias (exact linear algebra, done in f32).
    wo_val = jnp.broadcast_to(wv2, (mid, action_dim))                     # wv2 in every column
    wo_adv = wa2 - jnp.mean(wa2, axis=1, keepdims=True)                   # mean-centered columns
    bo = bv2.reshape(1, 1) + ba2 - jnp.mean(ba2, axis=1, keepdims=True)   # (1, action_dim)
    wo = jnp.concatenate([wo_val, wo_adv], axis=0)                        # (2*mid, action_dim)
    wo = jnp.pad(wo, ((0, 0), (0, n_out - action_dim))).astype(bf16)      # lane-pad to n_out
    bo = jnp.pad(bo, ((0, 0), (0, n_out - action_dim))).astype(f32)

    return (
        w1.astype(bf16), b1.astype(f32),
        w2.astype(bf16), b2.astype(f32),
        wh, bh,
        wo, bo,
    )


def qnet_twin_duel_forward(state, params, *, tile_b=2048):
    """Pallas-backed forward() of QNetTwinDuel (first value/advantage heads)."""
    prepared = prepare_params(params)
    w1 = prepared[0]
    wo = prepared[6]
    batch, state_dim = state.shape
    mid = w1.shape[1]
    n_out = wo.shape[1]
    action_dim = params[10].shape[1]      # wa2: (mid, action_dim)

    in_itemsize = state.dtype.itemsize
    weight_bytes = sum(int(p.size) * p.dtype.itemsize for p in prepared)

    def step_vmem(tb_):
        acts = tb_ * (mid + 2 * mid + n_out) * 4                       # f32 intermediates
        io = 2 * tb_ * state_dim * in_itemsize + 2 * tb_ * n_out * 4   # double-buffered blocks
        return io + 2 * weight_bytes + acts

    # --- batch tiling (no wrapper-side padding; ragged last block is masked by Pallas) ---
    if batch > tile_b:
        tb = tile_b
    elif batch >= 2 * _MIN_SPLIT:
        # Keep >= 2 grid steps so "parallel" batch tiles can land on both v7x TensorCores.
        tb = _round_up(pl.cdiv(batch, 2), 8)
    else:
        tb = batch                                     # tiny batch: single grid step
    while tb > 8 and step_vmem(tb) > _VMEM_BUDGET:     # cap for v7x's 64 MiB VMEM
        tb = _round_up(max(tb // 2, 8), 8)
    grid = (pl.cdiv(batch, tb),)

    in_specs = [pl.BlockSpec((tb, state_dim), lambda i: (i, 0))]
    # Weights/biases: full-array blocks with constant index_maps -> fetched once, VMEM-resident.
    # TODO(synk): pipeline_mode=pl.Buffered(1) on these would halve their VMEM on v7x for
    # large mid; left at the default double-buffering for maximum compiler compatibility.
    in_specs += [pl.BlockSpec(p.shape, lambda i: (0, 0)) for p in prepared]
    out_spec = pl.BlockSpec((tb, n_out), lambda i: (i, 0))

    flops = 2 * batch * (state_dim * mid + mid * mid + mid * (2 * mid) + (2 * mid) * n_out)
    bytes_accessed = int(batch * state_dim * in_itemsize + batch * n_out * 4 + weight_bytes)
    cost = pl.CostEstimate(flops=int(flops), transcendentals=0, bytes_accessed=bytes_accessed)

    # Explicit scoped-VMEM limit (v5e default is only 16 MiB); never above v7x's 64 MiB.
    vmem_limit = int(min(64 * 1024 * 1024, max(32 * 1024 * 1024, 2 * step_vmem(tb))))

    q = pl.pallas_call(
        _qnet_twin_duel_kernel,
        out_shape=jax.ShapeDtypeStruct((batch, n_out), jnp.float32),
        grid=grid,
        in_specs=in_specs,
        out_specs=out_spec,
        compiler_params=pltpu.CompilerParams(
            dimension_semantics=("parallel",),
            vmem_limit_bytes=vmem_limit,
        ),
        cost_estimate=cost,
    )(state, *prepared)

    return q[:, :action_dim] if n_out != action_dim else q


def init_params(key, state_dim, mid_dim, action_dim):
    """Deterministic synthetic parameters. Weights stored as (in, out)."""
    def linear(k, fan_in, fan_out):
        kw, kb = jax.random.split(k)
        bound = 1.0 / jnp.sqrt(float(fan_in))
        w = jax.random.uniform(kw, (fan_in, fan_out), jnp.float32, -bound, bound)
        b = jax.random.uniform(kb, (1, fan_out), jnp.float32, -bound, bound)
        return w, b

    ks = jax.random.split(key, 6)
    w1, b1 = linear(ks[0], state_dim, mid_dim)      # net__state[0]
    w2, b2 = linear(ks[1], mid_dim, mid_dim)        # net__state[2]
    wv1, bv1 = linear(ks[2], mid_dim, mid_dim)      # net_val1[0]
    wv2, bv2 = linear(ks[3], mid_dim, 1)            # net_val1[2]
    wa1, ba1 = linear(ks[4], mid_dim, mid_dim)      # net_adv1[0]
    wa2, ba2 = linear(ks[5], mid_dim, action_dim)   # net_adv1[2]
    return (w1, b1, w2, b2, wv1, bv1, wv2, bv2, wa1, ba1, wa2, ba2)


def reference_forward_f32(state, params):
    """Pure-f32 JAX reference mirroring the PyTorch forward()."""
    (w1, b1, w2, b2, wv1, bv1, wv2, bv2, wa1, ba1, wa2, ba2) = params
    h = jnp.maximum(state @ w1 + b1, 0.0)
    h = jnp.maximum(h @ w2 + b2, 0.0)
    val = jnp.maximum(h @ wv1 + bv1, 0.0) @ wv2 + bv2
    adv = jnp.maximum(h @ wa1 + ba1, 0.0) @ wa2 + ba2
    return val + adv - adv.mean(axis=1, keepdims=True)


def reference_forward_mirrored(state, params):
    """Pure-JAX reference using the same fused/folded bf16 math as the kernel."""
    (w1, b1, w2, b2, wh, bh, wo, bo) = prepare_params(params)
    f32, bf16 = jnp.float32, jnp.bfloat16
    action_dim = params[10].shape[1]
    x = state.astype(bf16)
    h = jnp.maximum(jnp.dot(x, w1, preferred_element_type=f32) + b1, 0.0)
    h = jnp.maximum(jnp.dot(h.astype(bf16), w2, preferred_element_type=f32) + b2, 0.0)
    heads = jnp.maximum(jnp.dot(h.astype(bf16), wh, preferred_element_type=f32) + bh, 0.0)
    q = jnp.dot(heads.astype(bf16), wo, preferred_element_type=f32) + bo
    return q[:, :action_dim]


if __name__ == "__main__":
    # TODO(synk): get__q1_q2 (second value/advantage heads) is not part of forward() and
    # is not implemented here.
    batch, state_dim, mid_dim, action_dim = 8, 16, 32, 4

    key = jax.random.PRNGKey(0)
    k_params, k_state, k_big = jax.random.split(key, 3)
    params = init_params(k_params, state_dim, mid_dim, action_dim)
    state = jax.random.normal(k_state, (batch, state_dim), jnp.float32)

    # Small-batch path (single grid step, lane-dense 128-wide output block).
    q = jax.block_until_ready(qnet_twin_duel_forward(state, params))
    assert q.shape == (batch, action_dim)

    q_mirror = reference_forward_mirrored(state, params)
    assert jnp.allclose(q, q_mirror, atol=1e-4, rtol=1e-4), "mismatch vs mirrored-precision ref"

    q_f32 = reference_forward_f32(state, params)
    assert jnp.allclose(q, q_f32, atol=5e-2, rtol=5e-2), "mismatch vs f32 reference"

    # Larger, non-divisible batch: exercises the 2-step (megacore-shardable) grid and the
    # ragged last block -- no wrapper-side jnp.pad of state.
    big_batch = 1000
    state_big = jax.random.normal(k_big, (big_batch, state_dim), jnp.float32)
    q_big = jax.block_until_ready(qnet_twin_duel_forward(state_big, params))
    assert q_big.shape == (big_batch, action_dim)
    q_big_mirror = reference_forward_mirrored(state_big, params)
    assert jnp.allclose(q_big, q_big_mirror, atol=1e-4, rtol=1e-4), "gridded path mismatch"

    print("KERNEL_OK")
</pallas_src>

<mosaic_0001>
module attributes {stable_mosaic.version = 11 : i64} {
  func.func @_qnet_twin_duel_kernel(%arg0: i32, %arg1: memref<8x16xf32, #tpu.memory_space<vmem>>, %arg2: memref<16x32xbf16, #tpu.memory_space<vmem>>, %arg3: memref<1x32xf32, #tpu.memory_space<vmem>>, %arg4: memref<32x32xbf16, #tpu.memory_space<vmem>>, %arg5: memref<1x32xf32, #tpu.memory_space<vmem>>, %arg6: memref<32x64xbf16, #tpu.memory_space<vmem>>, %arg7: memref<1x64xf32, #tpu.memory_space<vmem>>, %arg8: memref<64x128xbf16, #tpu.memory_space<vmem>>, %arg9: memref<1x128xf32, #tpu.memory_space<vmem>>, %arg10: memref<8x128xf32, #tpu.memory_space<vmem>>) attributes {dimension_semantics = [#tpu.dimension_semantics<parallel>], iteration_bounds = array<i64: 1>, scalar_prefetch = 0 : i64, scratch_operands = 0 : i64, tpu.core_type = #tpu.core_type<tc>, window_params = [{transform_indices = @transform_0, window_bounds = array<i64: 8, 16>}, {pipeline_mode = #tpu.pipeline_mode<synchronous>, transform_indices = @transform_1, window_bounds = array<i64: 16, 32>}, {pipeline_mode = #tpu.pipeline_mode<synchronous>, transform_indices = @transform_2, window_bounds = array<i64: 1, 32>}, {pipeline_mode = #tpu.pipeline_mode<synchronous>, transform_indices = @transform_3, window_bounds = array<i64: 32, 32>}, {pipeline_mode = #tpu.pipeline_mode<synchronous>, transform_indices = @transform_4, window_bounds = array<i64: 1, 32>}, {pipeline_mode = #tpu.pipeline_mode<synchronous>, transform_indices = @transform_5, window_bounds = array<i64: 32, 64>}, {pipeline_mode = #tpu.pipeline_mode<synchronous>, transform_indices = @transform_6, window_bounds = array<i64: 1, 64>}, {pipeline_mode = #tpu.pipeline_mode<synchronous>, transform_indices = @transform_7, window_bounds = array<i64: 64, 128>}, {pipeline_mode = #tpu.pipeline_mode<synchronous>, transform_indices = @transform_8, window_bounds = array<i64: 1, 128>}, {transform_indices = @transform_9, window_bounds = array<i64: 8, 128>}]} {
    %c0 = arith.constant 0 : index
    %c0_0 = arith.constant 0 : index
    %0 = vector.load %arg1[%c0, %c0_0] : memref<8x16xf32, #tpu.memory_space<vmem>>, vector<8x16xf32>
    %1 = arith.truncf %0 : vector<8x16xf32> to vector<8x16xbf16>
    %c0_1 = arith.constant 0 : index
    %c0_2 = arith.constant 0 : index
    %2 = vector.load %arg2[%c0_1, %c0_2] : memref<16x32xbf16, #tpu.memory_space<vmem>>, vector<16x32xbf16>
    %cst = arith.constant dense<0.000000e+00> : vector<8x32xf32>
    %3 = tpu.matmul %1, %2, %cst {dimension_numbers = #tpu.dot_dimension_numbers<[1], [0], [0], [1], [0, 0, 1, 1], [], []>} : vector<8x16xbf16>, vector<16x32xbf16>, vector<8x32xf32> -> vector<8x32xf32>
    %c0_3 = arith.constant 0 : index
    %c0_4 = arith.constant 0 : index
    %4 = vector.load %arg3[%c0_3, %c0_4] : memref<1x32xf32, #tpu.memory_space<vmem>>, vector<1x32xf32>
    %5 = vector.broadcast %4 : vector<1x32xf32> to vector<8x32xf32>
    %6 = arith.addf %3, %5 : vector<8x32xf32>
    %cst_5 = arith.constant 0.000000e+00 : f32
    %7 = vector.broadcast %cst_5 : f32 to vector<8x32xf32>
    %8 = arith.maximumf %6, %7 : vector<8x32xf32>
    %9 = arith.truncf %8 : vector<8x32xf32> to vector<8x32xbf16>
    %c0_6 = arith.constant 0 : index
    %c0_7 = arith.constant 0 : index
    %10 = vector.load %arg4[%c0_6, %c0_7] : memref<32x32xbf16, #tpu.memory_space<vmem>>, vector<32x32xbf16>
    %cst_8 = arith.constant dense<0.000000e+00> : vector<8x32xf32>
    %11 = tpu.matmul %9, %10, %cst_8 {dimension_numbers = #tpu.dot_dimension_numbers<[1], [0], [0], [1], [0, 0, 1, 1], [], []>} : vector<8x32xbf16>, vector<32x32xbf16>, vector<8x32xf32> -> vector<8x32xf32>
    %c0_9 = arith.constant 0 : index
    %c0_10 = arith.constant 0 : index
    %12 = vector.load %arg5[%c0_9, %c0_10] : memref<1x32xf32, #tpu.memory_space<vmem>>, vector<1x32xf32>
    %13 = vector.broadcast %12 : vector<1x32xf32> to vector<8x32xf32>
    %14 = arith.addf %11, %13 : vector<8x32xf32>
    %cst_11 = arith.constant 0.000000e+00 : f32
    %15 = vector.broadcast %cst_11 : f32 to vector<8x32xf32>
    %16 = arith.maximumf %14, %15 : vector<8x32xf32>
    %17 = arith.truncf %16 : vector<8x32xf32> to vector<8x32xbf16>
    %c0_12 = arith.constant 0 : index
    %c0_13 = arith.constant 0 : index
    %18 = vector.load %arg6[%c0_12, %c0_13] : memref<32x64xbf16, #tpu.memory_space<vmem>>, vector<32x64xbf16>
    %cst_14 = arith.constant dense<0.000000e+00> : vector<8x64xf32>
    %19 = tpu.matmul %17, %18, %cst_14 {dimension_numbers = #tpu.dot_dimension_numbers<[1], [0], [0], [1], [0, 0, 1, 1], [], []>} : vector<8x32xbf16>, vector<32x64xbf16>, vector<8x64xf32> -> vector<8x64xf32>
    %c0_15 = arith.constant 0 : index
    %c0_16 = arith.constant 0 : index
    %20 = vector.load %arg7[%c0_15, %c0_16] : memref<1x64xf32, #tpu.memory_space<vmem>>, vector<1x64xf32>
    %21 = vector.broadcast %20 : vector<1x64xf32> to vector<8x64xf32>
    %22 = arith.addf %19, %21 : vector<8x64xf32>
    %cst_17 = arith.constant 0.000000e+00 : f32
    %23 = vector.broadcast %cst_17 : f32 to vector<8x64xf32>
    %24 = arith.maximumf %22, %23 : vector<8x64xf32>
    %25 = arith.truncf %24 : vector<8x64xf32> to vector<8x64xbf16>
    %c0_18 = arith.constant 0 : index
    %c0_19 = arith.constant 0 : index
    %26 = vector.load %arg8[%c0_18, %c0_19] : memref<64x128xbf16, #tpu.memory_space<vmem>>, vector<64x128xbf16>
    %cst_20 = arith.constant dense<0.000000e+00> : vector<8x128xf32>
    %27 = tpu.matmul %25, %26, %cst_20 {dimension_numbers = #tpu.dot_dimension_numbers<[1], [0], [0], [1], [0, 0, 1, 1], [], []>} : vector<8x64xbf16>, vector<64x128xbf16>, vector<8x128xf32> -> vector<8x128xf32>
    %c0_21 = arith.constant 0 : index
    %c0_22 = arith.constant 0 : index
    %28 = vector.load %arg9[%c0_21, %c0_22] : memref<1x128xf32, #tpu.memory_space<vmem>>, vector<1x128xf32>
    %29 = vector.broadcast %28 : vector<1x128xf32> to vector<8x128xf32>
    %30 = arith.addf %27, %29 : vector<8x128xf32>
    %c0_23 = arith.constant 0 : index
    %c0_24 = arith.constant 0 : index
    %31 = vector.load %arg10[%c0_23, %c0_24] : memref<8x128xf32, #tpu.memory_space<vmem>>, vector<8x128xf32>
    tpu.vector_store %arg10[%c0_23, %c0_24], %30 {strides = array<i32>} : memref<8x128xf32, #tpu.memory_space<vmem>>, vector<8x128xf32>,
    return
  }
  func.func @transform_0(%arg0: i32) -> (i32, i32) {
    %c0_i32 = arith.constant 0 : i32
    %c0_i32_0 = arith.constant 0 : i32
    return %arg0, %c0_i32 : i32, i32
  }
  func.func @transform_1(%arg0: i32) -> (i32, i32) {
    %c0_i32 = arith.constant 0 : i32
    %c0_i32_0 = arith.constant 0 : i32
    %c0_i32_1 = arith.constant 0 : i32
    return %c0_i32, %c0_i32_0 : i32, i32
  }
  func.func @transform_2(%arg0: i32) -> (i32, i32) {
    %c0_i32 = arith.constant 0 : i32
    %c0_i32_0 = arith.constant 0 : i32
    %c0_i32_1 = arith.constant 0 : i32
    return %c0_i32, %c0_i32_0 : i32, i32
  }
  func.func @transform_3(%arg0: i32) -> (i32, i32) {
    %c0_i32 = arith.constant 0 : i32
    %c0_i32_0 = arith.constant 0 : i32
    %c0_i32_1 = arith.constant 0 : i32
    return %c0_i32, %c0_i32_0 : i32, i32
  }
  func.func @transform_4(%arg0: i32) -> (i32, i32) {
    %c0_i32 = arith.constant 0 : i32
    %c0_i32_0 = arith.constant 0 : i32
    %c0_i32_1 = arith.constant 0 : i32
    return %c0_i32, %c0_i32_0 : i32, i32
  }
  func.func @transform_5(%arg0: i32) -> (i32, i32) {
    %c0_i32 = arith.constant 0 : i32
    %c0_i32_0 = arith.constant 0 : i32
    %c0_i32_1 = arith.constant 0 : i32
    return %c0_i32, %c0_i32_0 : i32, i32
  }
  func.func @transform_6(%arg0: i32) -> (i32, i32) {
    %c0_i32 = arith.constant 0 : i32
    %c0_i32_0 = arith.constant 0 : i32
    %c0_i32_1 = arith.constant 0 : i32
    return %c0_i32, %c0_i32_0 : i32, i32
  }
  func.func @transform_7(%arg0: i32) -> (i32, i32) {
    %c0_i32 = arith.constant 0 : i32
    %c0_i32_0 = arith.constant 0 : i32
    %c0_i32_1 = arith.constant 0 : i32
    return %c0_i32, %c0_i32_0 : i32, i32
  }
  func.func @transform_8(%arg0: i32) -> (i32, i32) {
    %c0_i32 = arith.constant 0 : i32
    %c0_i32_0 = arith.constant 0 : i32
    %c0_i32_1 = arith.constant 0 : i32
    return %c0_i32, %c0_i32_0 : i32, i32
  }
  func.func @transform_9(%arg0: i32) -> (i32, i32) {
    %c0_i32 = arith.constant 0 : i32
    %c0_i32_0 = arith.constant 0 : i32
    return %arg0, %c0_i32 : i32, i32
  }
}

</mosaic_0001>

<bundles_post_ra>
// kernel: tpu_custom_call.1
= control target key start
LH: loop header
LB: loop body
LE: loop exit
PB: predicated region body
PF: predicated region fallthrough
CT: control target
= control target key end

     0   :  { %14 = vsyncpa [#allocation3], 0  ;;  %s740_s0 = inlined_call_operand.hbm [shape: f32[8,16], index: 0, kind: input, shape index: {}]   ;;  %s741_s1 = inlined_call_operand.hbm [shape: bf16[16,32], index: 1, kind: input, shape index: {}]   ;;  %s742_s2 = inlined_call_operand.vmem [shape: f32[1,32], index: 2, kind: input, shape index: {}]   ;;  %s743_s3 = inlined_call_operand.hbm [shape: bf16[32,32], index: 3, kind: input, shape index: {}]   ;;  %s744_s4 = inlined_call_operand.vmem [shape: f32[1,32], index: 4, kind: input, shape index: {}]   ;;  %s745_s5 = inlined_call_operand.vmem [shape: bf16[32,64], index: 5, kind: input, shape index: {}]   ;;  %s746_s6 = inlined_call_operand.vmem [shape: f32[1,64], index: 6, kind: input, shape index: {}]   ;;  %s747_s7 = inlined_call_operand.hbm [shape: bf16[64,128], index: 7, kind: input, shape index: {}]   ;;  %s748_s8 = inlined_call_operand.vmem [shape: f32[1,128], index: 8, kind: input, shape index: {}]   ;;  %s749_s9 = inlined_call_operand.hbm [shape: f32[8,128], index: 9, kind: output, shape index: {}]  }
   0x1   :  { %15 = vsyncpa [#allocation6], 0 }
   0x2   :  { %16 = vsyncpa [#allocation9], 0 }
   0x3   :  { %17 = vsyncpa [#allocation4], 0  ;;  %s588_s30 = smov [#allocation5]   ;;  %s470_s13 = scalar_lea.hbm %s741_s1, 128 }
   0x4   :  { %s33_s10 = sshll.u32 %s588_s30, 4  ;;  %p471_p0 = scmp.ne.s32.totalorder %s741_s1, %s470_s13  ;;  %s34_s10 = int_to_ptr.vmem [resolvable:$true] %s33_s10 }
   0x5   :  { %p474_p1 = scmp.lt.u32.totalorder %s470_s13, %s741_s1 }
   0x7   :  { %p476_p2 = pnand %p474_p1, %p471_p0 }
   0x9   :  { %479 = shalt.err (!%p476_p2)
}
   0xa   :  { %s480_s18 = scalar_lea.vmem %s34_s10, 128  ;;  %p485_p4 = scmp.lt.s32.totalorder %s34_s10, %s34_s10 }
   0xb   :  { %p481_p3 = scmp.ne.s32.totalorder %s34_s10, %s480_s18  ;;  %p486_p5 = scmp.lt.s32.totalorder %s480_s18, %s480_s18 }
   0xd   :  { %p487_p6 = por %p486_p5, %p485_p4 }
   0xf   :  { %p488_p7 = pnand %p487_p6, %p481_p3 }
  0x11   :  { %491 = shalt.err (!%p488_p7)
}
  0x12   :  { %s589_s19 = smov 64   ;;  %s590_s20 = smov 4  }
  0x13   :  { %39 = dma.hbm_to_vmem [thread:$0]  %s741_s1, 128, %s34_s10, [#allocation6], %s589_s19, %s589_s19, %s590_s20  }
  0x14   :  { %s591_s23 = smov [#allocation2]   ;;  %s592_s25 = smov [#allocation7]  }
  0x15   :  { %s24_s24 = sshll.u32 %s591_s23, 4  ;;  %s47_s26 = sshll.u32 %s592_s25, 4  ;;  %s25_s24 = int_to_ptr.vmem [resolvable:$true] %s24_s24  ;;  %s48_s26 = int_to_ptr.vmem [resolvable:$true] %s47_s26 }
  0x16   :  { %s492_s29 = scalar_lea.hbm %s740_s0, 128 }
  0x17   :  { %p493_p8 = scmp.ne.s32.totalorder %s740_s0, %s492_s29  ;;  %p496_p9 = scmp.lt.u32.totalorder %s492_s29, %s740_s0 }
  0x19   :  { %p498_p10 = pnand %p496_p9, %p493_p8 }
  0x1b   :  { %501 = shalt.err (!%p498_p10)
}
  0x1c   :  { %s502_s1 = scalar_lea.vmem %s25_s24, 128  ;;  %p507_p12 = scmp.lt.s32.totalorder %s25_s24, %s25_s24 }
  0x1d   :  { %p503_p11 = scmp.ne.s32.totalorder %s25_s24, %s502_s1  ;;  %p508_p13 = scmp.lt.s32.totalorder %s502_s1, %s502_s1 }
  0x1f   :  { %p509_p0 = por %p508_p13, %p507_p12 }
  0x21   :  { %p510_p1 = pnand %p509_p0, %p503_p11 }
  0x23   :  { %513 = shalt.err (!%p510_p1)
}
  0x24   :  { %27 = dma.hbm_to_vmem [thread:$0]  %s740_s0, 128, %s25_s24, [#allocation3]  }
  0x25   :  { %s514_s17 = scalar_lea.hbm %s743_s3, 256 }
  0x26   :  { %p515_p2 = scmp.ne.s32.totalorder %s743_s3, %s514_s17  ;;  %p518_p3 = scmp.lt.u32.totalorder %s514_s17, %s743_s3 }
  0x28   :  { %p520_p4 = pnand %p518_p3, %p515_p2 }
  0x2a   :  { %523 = shalt.err (!%p520_p4)
}
  0x2b   :  { %s524_s25 = scalar_lea.vmem %s48_s26, 256  ;;  %p529_p6 = scmp.lt.s32.totalorder %s48_s26, %s48_s26 }
  0x2c   :  { %p525_p5 = scmp.ne.s32.totalorder %s48_s26, %s524_s25  ;;  %p530_p7 = scmp.lt.s32.totalorder %s524_s25, %s524_s25 }
  0x2e   :  { %p531_p8 = por %p530_p7, %p529_p6 }
  0x30   :  { %p532_p9 = pnand %p531_p8, %p525_p5 }
  0x32   :  { %535 = shalt.err (!%p532_p9)
}
  0x33   :  { %53 = dma.hbm_to_vmem [thread:$0]  %s743_s3, 256, %s48_s26, [#allocation6], %s589_s19, %s589_s19, %s590_s20  }
  0x34   :  { %s593_s27 = smov [#allocation8]   ;;  %s536_s11 = scalar_lea.hbm %s747_s7, 512 }
  0x35   :  { %s65_s28 = sshll.u32 %s593_s27, 4  ;;  %p537_p10 = scmp.ne.s32.totalorder %s747_s7, %s536_s11  ;;  %s66_s28 = int_to_ptr.vmem [resolvable:$true] %s65_s28 }
  0x36   :  { %p540_p11 = scmp.lt.u32.totalorder %s536_s11, %s747_s7 }
  0x38   :  { %p542_p12 = pnand %p540_p11, %p537_p10 }
  0x3a   :  { %545 = shalt.err (!%p542_p12)
}
  0x3b   :  { %s546_s14 = scalar_lea.vmem %s66_s28, 512  ;;  %p551_p0 = scmp.lt.s32.totalorder %s66_s28, %s66_s28 }
  0x3c   :  { %p547_p13 = scmp.ne.s32.totalorder %s66_s28, %s546_s14  ;;  %p552_p1 = scmp.lt.s32.totalorder %s546_s14, %s546_s14 }
  0x3e   :  { %p553_p2 = por %p552_p1, %p551_p0 }
  0x40   :  { %p554_p3 = pnand %p553_p2, %p547_p13 }
  0x42   :  { %557 = shalt.err (!%p554_p3)
}
  0x43   :  { %71 = dma.hbm_to_vmem [thread:$0]  %s747_s7, 512, %s66_s28, [#allocation9], %s589_s19, %s589_s19, %s590_s20  }
  0x44   :  { %580 = dma.done.wait [#allocation3], 128  }
  0x45   :  { %581 = vsyncadd [#allocation3], 4294967168 }
  0x46   :  { %582 = dma.done.wait [#allocation6], 384  }
  0x47   :  { %583 = vsyncadd [#allocation6], 4294966912 }
  0x48   :  { %584 = dma.done.wait [#allocation9], 512  }
  0x49   :  { %585 = vsyncadd [#allocation9], 4294966784  ;;  %v594_v0 = vmov 0.0   ;;  %vm595_vm0 = vmmov 0   ;;  %v461_v1 = vld [vmem:[#allocation5] sm:$0xff]   ;;  %v87_v2 = vld [vmem:[#allocation2] sm:$0xff] }
  0x4a   :  { %418 = vmatprep.subr.bf16.mxu0 %v594_v0  ;;  %420 = vmatprep.mubr.msk.bf16.mxu0 %vm595_vm0, %v594_v0  ;;  %v88_v3 = vpack.c.bf16 %v87_v2, %v87_v2  ;;  %vm104_vm1 = vcmask 130048   ;;  %v462_v4 = vld [vmem:[#allocation7] sm:$0xff]   ;;  %v463_v5 = vld [vmem:[#allocation7 + $0x8] sm:$0xff]   ;;  %vm173_vm2 = vcmask 261120   ;;  %v466_v16 = vld [vmem:[#allocation8] sm:$0xff]   ;;  %vm326_vm3 = vcmask 523264  }
  0x4b   :  { %440 = vmatprep.subr.bf16.mxu1 %v594_v0  ;;  %448 = vmatprep.mubr.msk.bf16.mxu1 %vm595_vm0, %v594_v0  ;;  %v388_v6 = vld [vmem:[%s742_s2] ss:$0 sm:$0xff]  ;;  %v465_v15 = vld [vmem:[%s745_s5 + $0x8] sm:$0xff]   ;;  %v467_v17 = vld [vmem:[#allocation8 + $0x8] sm:$0xff]   ;;  %s596_s23 = smov [#allocation10]  }
  0x4c   :  { %419 = vmatpush3.bf16.msra.mxu0 %v461_v1  ;;  %v464_v13 = vld [vmem:[%s745_s5] sm:$0xff]   ;;  %441 = vmatpush3.bf16.msra.mxu1 %v466_v16  ;;  %v469_v27 = vld [vmem:[#allocation8 + $0x18] sm:$0xff]   ;;  %s377_s25 = sshll.u32 %s596_s23, 4  ;;  %s378_s25 = int_to_ptr.vmem [resolvable:$true] %s377_s25 }
  0x4d   :  { %424 = vmatprep.subr.bf16.mxu0 %v594_v0  ;;  %442 = vmatprep.subr.bf16.mxu1 %v594_v0  ;;  %v391_v18 = vld [vmem:[%s744_s4] ss:$0 sm:$0xff]  ;;  %p563_p5 = scmp.lt.s32.totalorder %s378_s25, %s378_s25 }
  0x4e   :  { %v468_v26 = vld [vmem:[#allocation8 + $0x10] sm:$0xff]  }
  0x4f   :  { %421 = vmatmul.mubr.msk.bf16.vlgmr.msra.gmra.mrb[0].mxu0 %vm104_vm1, %v88_v3  ;;  %v395_v28 = vld [vmem:[%s746_s6] ss:$0 sm:$0xff]  ;;  %s558_s6 = scalar_lea.vmem %s378_s25, 128 }
  0x50   :  { %425 = vmatpush3.bf16.msra.mxu0 %v462_v4  ;;  %428 = vmatprep.mubr.msk.bf16.mxu0 %vm595_vm0, %v594_v0  ;;  %v399_v36 = vld [vmem:[%s748_s8] ss:$0 sm:$0xff]  ;;  %p559_p4 = scmp.ne.s32.totalorder %s378_s25, %s558_s6  ;;  %p564_p6 = scmp.lt.s32.totalorder %s558_s6, %s558_s6 }
  0x51   :  { %426 = vmatprep.subr.bf16.mxu0 %v594_v0  ;;  %443 = vmatpush3.bf16.msra.mxu1 %v467_v17 }
  0x52   :  { %444 = vmatprep.subr.bf16.mxu1 %v594_v0  ;;  %p565_p7 = por %p564_p6, %p563_p5 }
  0x54   :  { %427 = vmatpush3.bf16.msra.mxu0 %v463_v5  ;;  %p566_p8 = pnand %p565_p7, %p559_p4 }
  0x55   :  { %432 = vmatprep.subr.bf16.mxu0 %v594_v0  ;;  %445 = vmatpush3.bf16.msra.mxu1 %v468_v26 }
  0x56   :  { %446 = vmatprep.subr.bf16.mxu1 %v594_v0 }
  0x59   :  { %447 = vmatpush3.bf16.msra.mxu1 %v469_v27 }
 0x122   :  { %v142_v7 = vpop.f32.mrb[0].mxu0 }
 0x123   :  { %v143_v8 = vadd.f32 %v388_v6, %v142_v7  ;;  %v422_v9 = vpop.f32.mrb[1].mxu0 }
 0x124   :  { %v145_v10 = vpop.f32.mrb[2].mxu0 }
 0x125   :  { %v148_v11 = vmax.f32 %v143_v8, 0.0  ;;  %v423_v12 = vpop.f32.mrb[3].mxu0 }
 0x127   :  { %v149_v14 = vpack.c.bf16 %v148_v11, %v148_v11 }
 0x129   :  { %429 = vmatmul.mubr.msk.bf16.vlgmr.msra.gmra.mrb[4].mxu0 %vm173_vm2, %v149_v14 }
 0x12a   :  { %433 = vmatpush3.bf16.msra.mxu0 %v464_v13  ;;  %436 = vmatprep.mubr.msk.bf16.mxu0 %vm595_vm0, %v594_v0 }
 0x12b   :  { %434 = vmatprep.subr.bf16.mxu0 %v594_v0 }
 0x12e   :  { %435 = vmatpush3.bf16.msra.mxu0 %v465_v15 }
 0x1fc   :  { %v211_v19 = vpop.f32.mrb[4].mxu0 }
 0x1fd   :  { %v212_v20 = vadd.f32 %v391_v18, %v211_v19  ;;  %v430_v21 = vpop.f32.mrb[5].mxu0 }
 0x1fe   :  { %v214_v22 = vpop.f32.mrb[6].mxu0 }
 0x1ff   :  { %v217_v23 = vmax.f32 %v212_v20, 0.0  ;;  %v431_v24 = vpop.f32.mrb[7].mxu0 }
 0x201   :  { %v218_v25 = vpack.c.bf16 %v217_v23, %v217_v23 }
 0x203   :  { %437 = vmatmul.mubr.msk.bf16.vlgmr.msra.gmra.mrb[8].mxu0 %vm173_vm2, %v218_v25 }
 0x2d6   :  { %v279_v29 = vpop.f32.mrb[8].mxu0 }
 0x2d7   :  { %v280_v30 = vadd.f32 %v395_v28, %v279_v29  ;;  %v438_v31 = vpop.f32.mrb[9].mxu0 }
 0x2d8   :  { %v282_v32 = vpop.f32.mrb[10].mxu0 }
 0x2d9   :  { %v285_v33 = vmax.f32 %v280_v30, 0.0  ;;  %v439_v34 = vpop.f32.mrb[11].mxu0 }
 0x2db   :  { %v286_v35 = vpack.c.bf16 %v285_v33, %v285_v33 }
 0x2dd   :  { %449 = vmatmul.mubr.msk.bf16.vlgmr.msra.gmra.mrb[0].mxu1 %vm326_vm3, %v286_v35 }
 0x3b0   :  { %v364_v37 = vpop.f32.mrb[0].mxu1 }
 0x3b1   :  { %v365_v38 = vadd.f32 %v399_v36, %v364_v37  ;;  %v450_v39 = vpop.f32.mrb[1].mxu1 }
 0x3b2   :  { %v367_v40 = vpop.f32.mrb[2].mxu1 }
 0x3b3   :  { %370 = vst [vmem:[#allocation10] sm:$0xff] %v365_v38  ;;  %v451_v41 = vpop.f32.mrb[3].mxu1 }
 0x3b4   :  { %569 = shalt.err (!%p566_p8)
}
 0x3b5   :  { %s570_s8 = scalar_lea.hbm %s749_s9, 128 }
 0x3b6   :  { %p571_p9 = scmp.ne.s32.totalorder %s749_s9, %s570_s8  ;;  %p574_p10 = scmp.lt.u32.totalorder %s570_s8, %s749_s9 }
 0x3b8   :  { %p576_p11 = pnand %p574_p10, %p571_p9 }
 0x3ba   :  { %579 = shalt.err (!%p576_p11)
}
 0x3bb   :  { %380 = dma.vmem_to_hbm [thread:$0]  %s378_s25, 128, %s749_s9, [#allocation4]  }
 0x3bc   :  { %586 = dma.done.wait [#allocation4], 128  }
 0x3bd   :  { %587 = vsyncadd [#allocation4], 4294967168 }
 0x3be   :  { %384 = vsyncpa [#allocation3], 1 }
 0x3bf   :  { %385 = vsyncpa [#allocation6], 1 }
 0x3c0   :  { %386 = vsyncpa [#allocation9], 1 }
 0x3c1   :  { %387 = vsyncpa [#allocation4], 1 }

</bundles_post_ra>
